<compile_context>
chip_gen: v6e
topology: v6e:2x2x1
jax: 0.10.0
libtpu: 0.0.40
codegen_flags: <defaults>
</compile_context>

<pallas_src>
import jax
import jax.numpy as jnp
from jax.experimental import pallas as pl
from jax.experimental.pallas import tpu as pltpu


def _gin_classifier_kernel(
    x_ref,      # (N, H)     node features, feature dim zero-padded to H
    a_ref,      # (N, N)     adjacency with (1+eps)*I already folded in
    p_ref,      # (G, N)     one-hot pooling matrix
    w_ref,      # (4, H, H)  packed [w1a_pad, w2a, w1b, w2b]
    bh_ref,     # (4, H)     packed [b1a, b2a, b1b, b2b]
    wcp_ref,    # (2, H, C)  packed classifier weight halves [wc[:H], wc[H:]]
    bc_ref,     # (1, C)     classifier bias
    out_ref,    # (G, C)     logits for this minibatch
):
    h = x_ref[...]
    a = a_ref[...]          # self-loop term pre-folded: agg = A_hat @ h
    p = p_ref[...]

    # ---- GIN layer 1:  hA <- ReLU(ReLU((A_hat @ h) @ W1a + b1a) @ W2a + b2a) ----
    agg = jnp.dot(a, h, preferred_element_type=jnp.float32)
    t = jnp.maximum(
        jnp.dot(agg, w_ref[0], preferred_element_type=jnp.float32) + bh_ref[0:1, :],
        0.0)
    hA = jnp.maximum(
        jnp.dot(t, w_ref[1], preferred_element_type=jnp.float32) + bh_ref[1:2, :],
        0.0)

    # ---- GIN layer 2 ----
    agg = jnp.dot(a, hA, preferred_element_type=jnp.float32)
    t = jnp.maximum(
        jnp.dot(agg, w_ref[2], preferred_element_type=jnp.float32) + bh_ref[2:3, :],
        0.0)
    hB = jnp.maximum(
        jnp.dot(t, w_ref[3], preferred_element_type=jnp.float32) + bh_ref[3:4, :],
        0.0)

    # ---- fused pooling + classifier ----
    #   [P@hA | P@hB] @ wc + bc  ==  P @ (hA @ wc[:H] + hB @ wc[H:]) + bc
    # 3 MXU dots instead of 4, no (G,H) intermediates, no lane-axis concat.
    y = (jnp.dot(hA, wcp_ref[0], preferred_element_type=jnp.float32)
         + jnp.dot(hB, wcp_ref[1], preferred_element_type=jnp.float32))     # (N, C)
    out_ref[...] = jnp.dot(p, y, preferred_element_type=jnp.float32) + bc_ref[...]


def fold_self_loops(A, eps=0.0):
    """A_hat = A + (1+eps)*I so the kernel's single A_hat @ h matmul covers the
    GINConv self-term exactly (eps=0, train_eps=False -> compile-time constant)."""
    n = A.shape[0]
    return A + (1.0 + eps) * jnp.eye(n, dtype=A.dtype)


def pad_features(x, hidden):
    """Zero-pad node features (N, F_in) -> (N, hidden); padded columns stay zero
    through aggregation and meet zero rows of the padded w1a, so results are exact."""
    n, f_in = x.shape
    assert f_in <= hidden, "feature padding path assumes F_in <= hidden"
    if f_in == hidden:
        return x
    return jnp.pad(x, ((0, 0), (0, hidden - f_in)))


def pack_params(params, hidden):
    """Pack 10 parameter tensors into 4 kernel operands (done once, outside the kernel)."""
    f_in = params["w1a"].shape[0]
    assert f_in <= hidden, "weight padding path assumes F_in <= hidden"
    w1a_pad = jnp.zeros((hidden, hidden), jnp.float32).at[:f_in, :].set(params["w1a"])
    return dict(
        w_all=jnp.stack([w1a_pad, params["w2a"], params["w1b"], params["w2b"]], 0),  # (4,H,H)
        b_h=jnp.concatenate(
            [params["b1a"], params["b2a"], params["b1b"], params["b2b"]], 0),        # (4,H)
        wc_split=jnp.stack([params["wc"][:hidden], params["wc"][hidden:]], 0),       # (2,H,C)
        bc=params["bc"],                                                              # (1,C)
    )


def gcl_classifier_forward(x_pad, a_hat, P, packed):
    """x_pad: (B, N, H) padded node features, a_hat: (B, N, N) dense adjacency with
    self-loops folded, P: (B, G, N) pooling matrices, packed: output of pack_params.
    Returns logits (B, G, C). One grid step per graph minibatch."""
    B, N, H = x_pad.shape
    G = P.shape[1]
    C = packed["wc_split"].shape[-1]

    operands = (
        x_pad, a_hat, P,
        packed["w_all"], packed["b_h"], packed["wc_split"], packed["bc"],
    )

    in_specs = [
        # per-minibatch slabs: one (squeezed) batch slice per grid step
        pl.BlockSpec((None, N, H), lambda b: (b, 0, 0)),
        pl.BlockSpec((None, N, N), lambda b: (b, 0, 0)),
        pl.BlockSpec((None, G, N), lambda b: (b, 0, 0)),
        # weights: constant block index across the grid -> stay resident in VMEM
        pl.BlockSpec((4, H, H), lambda b: (0, 0, 0)),
        pl.BlockSpec((4, H), lambda b: (0, 0)),
        pl.BlockSpec((2, H, C), lambda b: (0, 0, 0)),
        pl.BlockSpec((1, C), lambda b: (0, 0)),
    ]

    return pl.pallas_call(
        _gin_classifier_kernel,
        out_shape=jax.ShapeDtypeStruct((B, G, C), jnp.float32),
        grid=(B,),
        in_specs=in_specs,
        out_specs=pl.BlockSpec((None, G, C), lambda b: (b, 0, 0)),
        # batch axis is embarrassingly parallel: lets v7x's 2 TCs split the grid;
        # harmless on v5e/v6e (1 TC). No vmem_limit override: working set << scoped VMEM.
        compiler_params=pltpu.CompilerParams(dimension_semantics=("parallel",)),
    )(*operands)
    # TODO(synk): if C or G grows, lay the output out lane-dense (pad/pack last dim to
    # a multiple of 128) to avoid masked vst.msk partial stores.


def build_dense_graph(edge_index, edge_weight, batch, num_nodes, num_graphs):
    """Glue: dense adjacency (dst x src, no self-loops) and one-hot pooling matrix."""
    src, dst = edge_index[0], edge_index[1]
    if edge_weight is None:
        edge_weight = jnp.ones(src.shape[0], dtype=jnp.float32)
    A = jnp.zeros((num_nodes, num_nodes), dtype=jnp.float32)
    A = A.at[dst, src].add(edge_weight)
    P = (batch[None, :] == jnp.arange(num_graphs)[:, None]).astype(jnp.float32)
    return A, P


def init_params(key, f_in, hidden, num_classes):
    ks = jax.random.split(key, 5)

    def lin(k, fan_in, fan_out):
        bound = 1.0 / jnp.sqrt(fan_in)
        kw, kb = jax.random.split(k)
        w = jax.random.uniform(kw, (fan_in, fan_out), jnp.float32, -bound, bound)
        b = jax.random.uniform(kb, (1, fan_out), jnp.float32, -bound, bound)
        return w, b

    w1a, b1a = lin(ks[0], f_in, hidden)
    w2a, b2a = lin(ks[1], hidden, hidden)
    w1b, b1b = lin(ks[2], hidden, hidden)
    w2b, b2b = lin(ks[3], hidden, hidden)
    wc, bc = lin(ks[4], 2 * hidden, num_classes)
    return dict(w1a=w1a, b1a=b1a, w2a=w2a, b2a=b2a,
                w1b=w1b, b1b=b1b, w2b=w2b, b2b=b2b,
                wc=wc, bc=bc)


def reference_forward(x, A, P, params):
    """Pure-JAX reference of the *original* formulation (explicit self-term, raw F_in
    features, lane-axis concat) to validate every kernel-side refactoring."""
    eps = 0.0
    h = x
    agg = A @ h + (1.0 + eps) * h
    h = jnp.maximum(
        jnp.maximum(agg @ params["w1a"] + params["b1a"], 0.0) @ params["w2a"]
        + params["b2a"], 0.0)
    g1 = P @ h
    agg = A @ h + (1.0 + eps) * h
    h = jnp.maximum(
        jnp.maximum(agg @ params["w1b"] + params["b1b"], 0.0) @ params["w2b"]
        + params["b2b"], 0.0)
    g2 = P @ h
    x_g = jnp.concatenate([g1, g2], axis=-1)
    return x_g @ params["wc"] + params["bc"]


if __name__ == "__main__":
    key = jax.random.PRNGKey(0)

    # B independent graph minibatches per pallas_call; each: N nodes, G graphs.
    B, N, F_IN, HIDDEN, G, C, E = 8, 32, 16, 32, 4, 3, 96

    xs, As, Ps = [], [], []
    for b in range(B):
        kb = jax.random.fold_in(key, b)
        k_x, k_e, k_w, k_p = jax.random.split(kb, 4)
        x = jax.random.normal(k_x, (N, F_IN), dtype=jnp.float32)
        edge_index = jax.random.randint(k_e, (2, E), 0, N, dtype=jnp.int32)
        edge_weight = jnp.abs(jax.random.normal(k_w, (E,), dtype=jnp.float32))
        batch_vec = jnp.sort(jax.random.randint(k_p, (N,), 0, G, dtype=jnp.int32))
        A, P = build_dense_graph(edge_index, edge_weight, batch_vec, N, G)
        xs.append(x)
        As.append(A)
        Ps.append(P)

    x_b = jnp.stack(xs)          # (B, N, F_IN)
    A_b = jnp.stack(As)          # (B, N, N)
    P_b = jnp.stack(Ps)          # (B, G, N)

    params = init_params(jax.random.PRNGKey(42), F_IN, HIDDEN, C)

    # one-time prep (outside the kernel hot path)
    a_hat_b = jax.vmap(lambda A: fold_self_loops(A, eps=0.0))(A_b)   # (B, N, N)
    x_pad_b = jax.vmap(lambda x: pad_features(x, HIDDEN))(x_b)       # (B, N, H)
    packed = pack_params(params, HIDDEN)

    logits = gcl_classifier_forward(x_pad_b, a_hat_b, P_b, packed)
    logits = jax.block_until_ready(logits)

    ref = jnp.stack([reference_forward(x_b[b], A_b[b], P_b[b], params)
                     for b in range(B)])
    assert logits.shape == (B, G, C)
    assert jnp.allclose(logits, ref, atol=1e-4, rtol=1e-4)

    print("KERNEL_OK")
</pallas_src>

<mosaic_0001>
module attributes {stable_mosaic.version = 11 : i64} {
  func.func @_gin_classifier_kernel(%arg0: i32, %arg1: memref<1x32x32xf32, #tpu.memory_space<vmem>>, %arg2: memref<1x32x32xf32, #tpu.memory_space<vmem>>, %arg3: memref<1x4x32xf32, #tpu.memory_space<vmem>>, %arg4: memref<4x32x32xf32, #tpu.memory_space<vmem>>, %arg5: memref<4x32xf32, #tpu.memory_space<vmem>>, %arg6: memref<2x32x3xf32, #tpu.memory_space<vmem>>, %arg7: memref<1x3xf32, #tpu.memory_space<vmem>>, %arg8: memref<1x4x3xf32, #tpu.memory_space<vmem>>) attributes {dimension_semantics = [#tpu.dimension_semantics<parallel>], iteration_bounds = array<i64: 8>, scalar_prefetch = 0 : i64, scratch_operands = 0 : i64, tpu.core_type = #tpu.core_type<tc>, window_params = [{transform_indices = @transform_0, window_bounds = array<i64: 1, 32, 32>}, {transform_indices = @transform_1, window_bounds = array<i64: 1, 32, 32>}, {transform_indices = @transform_2, window_bounds = array<i64: 1, 4, 32>}, {pipeline_mode = #tpu.pipeline_mode<synchronous>, transform_indices = @transform_3, window_bounds = array<i64: 4, 32, 32>}, {pipeline_mode = #tpu.pipeline_mode<synchronous>, transform_indices = @transform_4, window_bounds = array<i64: 4, 32>}, {pipeline_mode = #tpu.pipeline_mode<synchronous>, transform_indices = @transform_5, window_bounds = array<i64: 2, 32, 3>}, {pipeline_mode = #tpu.pipeline_mode<synchronous>, transform_indices = @transform_6, window_bounds = array<i64: 1, 3>}, {transform_indices = @transform_7, window_bounds = array<i64: 1, 4, 3>}]} {
    %c0 = arith.constant 0 : index
    %c0_0 = arith.constant 0 : index
    %c0_1 = arith.constant 0 : index
    %0 = vector.load %arg1[%c0, %c0_0, %c0_1] : memref<1x32x32xf32, #tpu.memory_space<vmem>>, vector<1x32x32xf32>
    %1 = vector.shape_cast %0 : vector<1x32x32xf32> to vector<32x32xf32>
    %c0_2 = arith.constant 0 : index
    %c0_3 = arith.constant 0 : index
    %c0_4 = arith.constant 0 : index
    %2 = vector.load %arg2[%c0_2, %c0_3, %c0_4] : memref<1x32x32xf32, #tpu.memory_space<vmem>>, vector<1x32x32xf32>
    %3 = vector.shape_cast %2 : vector<1x32x32xf32> to vector<32x32xf32>
    %c0_5 = arith.constant 0 : index
    %c0_6 = arith.constant 0 : index
    %c0_7 = arith.constant 0 : index
    %4 = vector.load %arg3[%c0_5, %c0_6, %c0_7] : memref<1x4x32xf32, #tpu.memory_space<vmem>>, vector<1x4x32xf32>
    %5 = vector.shape_cast %4 : vector<1x4x32xf32> to vector<4x32xf32>
    %cst = arith.constant dense<0.000000e+00> : vector<32x32xf32>
    %6 = tpu.matmul %3, %1, %cst {dimension_numbers = #tpu.dot_dimension_numbers<[1], [0], [0], [1], [0, 0, 1, 1], [], []>} : vector<32x32xf32>, vector<32x32xf32>, vector<32x32xf32> -> vector<32x32xf32>
    %c0_8 = arith.constant 0 : index
    %c0_9 = arith.constant 0 : index
    %c0_10 = arith.constant 0 : index
    %7 = vector.load %arg4[%c0_8, %c0_9, %c0_10] : memref<4x32x32xf32, #tpu.memory_space<vmem>>, vector<1x32x32xf32>
    %8 = vector.shape_cast %7 : vector<1x32x32xf32> to vector<32x32xf32>
    %cst_11 = arith.constant dense<0.000000e+00> : vector<32x32xf32>
    %9 = tpu.matmul %6, %8, %cst_11 {dimension_numbers = #tpu.dot_dimension_numbers<[1], [0], [0], [1], [0, 0, 1, 1], [], []>} : vector<32x32xf32>, vector<32x32xf32>, vector<32x32xf32> -> vector<32x32xf32>
    %c0_12 = arith.constant 0 : index
    %c0_13 = arith.constant 0 : index
    %10 = vector.load %arg5[%c0_12, %c0_13] : memref<4x32xf32, #tpu.memory_space<vmem>>, vector<1x32xf32>
    %11 = vector.broadcast %10 : vector<1x32xf32> to vector<32x32xf32>
    %12 = arith.addf %9, %11 : vector<32x32xf32>
    %cst_14 = arith.constant 0.000000e+00 : f32
    %13 = vector.broadcast %cst_14 : f32 to vector<32x32xf32>
    %14 = arith.maximumf %12, %13 : vector<32x32xf32>
    %c1 = arith.constant 1 : index
    %c0_15 = arith.constant 0 : index
    %c0_16 = arith.constant 0 : index
    %15 = vector.load %arg4[%c1, %c0_15, %c0_16] : memref<4x32x32xf32, #tpu.memory_space<vmem>>, vector<1x32x32xf32>
    %16 = vector.shape_cast %15 : vector<1x32x32xf32> to vector<32x32xf32>
    %cst_17 = arith.constant dense<0.000000e+00> : vector<32x32xf32>
    %17 = tpu.matmul %14, %16, %cst_17 {dimension_numbers = #tpu.dot_dimension_numbers<[1], [0], [0], [1], [0, 0, 1, 1], [], []>} : vector<32x32xf32>, vector<32x32xf32>, vector<32x32xf32> -> vector<32x32xf32>
    %c1_18 = arith.constant 1 : index
    %c0_19 = arith.constant 0 : index
    %18 = vector.load %arg5[%c1_18, %c0_19] : memref<4x32xf32, #tpu.memory_space<vmem>>, vector<1x32xf32>
    %19 = vector.broadcast %18 : vector<1x32xf32> to vector<32x32xf32>
    %20 = arith.addf %17, %19 : vector<32x32xf32>
    %cst_20 = arith.constant 0.000000e+00 : f32
    %21 = vector.broadcast %cst_20 : f32 to vector<32x32xf32>
    %22 = arith.maximumf %20, %21 : vector<32x32xf32>
    %cst_21 = arith.constant dense<0.000000e+00> : vector<32x32xf32>
    %23 = tpu.matmul %3, %22, %cst_21 {dimension_numbers = #tpu.dot_dimension_numbers<[1], [0], [0], [1], [0, 0, 1, 1], [], []>} : vector<32x32xf32>, vector<32x32xf32>, vector<32x32xf32> -> vector<32x32xf32>
    %c2 = arith.constant 2 : index
    %c0_22 = arith.constant 0 : index
    %c0_23 = arith.constant 0 : index
    %24 = vector.load %arg4[%c2, %c0_22, %c0_23] : memref<4x32x32xf32, #tpu.memory_space<vmem>>, vector<1x32x32xf32>
    %25 = vector.shape_cast %24 : vector<1x32x32xf32> to vector<32x32xf32>
    %cst_24 = arith.constant dense<0.000000e+00> : vector<32x32xf32>
    %26 = tpu.matmul %23, %25, %cst_24 {dimension_numbers = #tpu.dot_dimension_numbers<[1], [0], [0], [1], [0, 0, 1, 1], [], []>} : vector<32x32xf32>, vector<32x32xf32>, vector<32x32xf32> -> vector<32x32xf32>
    %c2_25 = arith.constant 2 : index
    %c0_26 = arith.constant 0 : index
    %27 = vector.load %arg5[%c2_25, %c0_26] : memref<4x32xf32, #tpu.memory_space<vmem>>, vector<1x32xf32>
    %28 = vector.broadcast %27 : vector<1x32xf32> to vector<32x32xf32>
    %29 = arith.addf %26, %28 : vector<32x32xf32>
    %cst_27 = arith.constant 0.000000e+00 : f32
    %30 = vector.broadcast %cst_27 : f32 to vector<32x32xf32>
    %31 = arith.maximumf %29, %30 : vector<32x32xf32>
    %c3 = arith.constant 3 : index
    %c0_28 = arith.constant 0 : index
    %c0_29 = arith.constant 0 : index
    %32 = vector.load %arg4[%c3, %c0_28, %c0_29] : memref<4x32x32xf32, #tpu.memory_space<vmem>>, vector<1x32x32xf32>
    %33 = vector.shape_cast %32 : vector<1x32x32xf32> to vector<32x32xf32>
    %cst_30 = arith.constant dense<0.000000e+00> : vector<32x32xf32>
    %34 = tpu.matmul %31, %33, %cst_30 {dimension_numbers = #tpu.dot_dimension_numbers<[1], [0], [0], [1], [0, 0, 1, 1], [], []>} : vector<32x32xf32>, vector<32x32xf32>, vector<32x32xf32> -> vector<32x32xf32>
    %c3_31 = arith.constant 3 : index
    %c0_32 = arith.constant 0 : index
    %35 = vector.load %arg5[%c3_31, %c0_32] : memref<4x32xf32, #tpu.memory_space<vmem>>, vector<1x32xf32>
    %36 = vector.broadcast %35 : vector<1x32xf32> to vector<32x32xf32>
    %37 = arith.addf %34, %36 : vector<32x32xf32>
    %cst_33 = arith.constant 0.000000e+00 : f32
    %38 = vector.broadcast %cst_33 : f32 to vector<32x32xf32>
    %39 = arith.maximumf %37, %38 : vector<32x32xf32>
    %c0_34 = arith.constant 0 : index
    %c0_35 = arith.constant 0 : index
    %c0_36 = arith.constant 0 : index
    %40 = vector.load %arg6[%c0_34, %c0_35, %c0_36] : memref<2x32x3xf32, #tpu.memory_space<vmem>>, vector<1x32x3xf32>
    %41 = vector.shape_cast %40 : vector<1x32x3xf32> to vector<32x3xf32>
    %cst_37 = arith.constant dense<0.000000e+00> : vector<32x3xf32>
    %42 = tpu.matmul %22, %41, %cst_37 {dimension_numbers = #tpu.dot_dimension_numbers<[1], [0], [0], [1], [0, 0, 1, 1], [], []>} : vector<32x32xf32>, vector<32x3xf32>, vector<32x3xf32> -> vector<32x3xf32>
    %c1_38 = arith.constant 1 : index
    %c0_39 = arith.constant 0 : index
    %c0_40 = arith.constant 0 : index
    %43 = vector.load %arg6[%c1_38, %c0_39, %c0_40] : memref<2x32x3xf32, #tpu.memory_space<vmem>>, vector<1x32x3xf32>
    %44 = vector.shape_cast %43 : vector<1x32x3xf32> to vector<32x3xf32>
    %cst_41 = arith.constant dense<0.000000e+00> : vector<32x3xf32>
    %45 = tpu.matmul %39, %44, %cst_41 {dimension_numbers = #tpu.dot_dimension_numbers<[1], [0], [0], [1], [0, 0, 1, 1], [], []>} : vector<32x32xf32>, vector<32x3xf32>, vector<32x3xf32> -> vector<32x3xf32>
    %46 = arith.addf %42, %45 : vector<32x3xf32>
    %cst_42 = arith.constant dense<0.000000e+00> : vector<4x3xf32>
    %47 = tpu.matmul %5, %46, %cst_42 {dimension_numbers = #tpu.dot_dimension_numbers<[1], [0], [0], [1], [0, 0, 1, 1], [], []>} : vector<4x32xf32>, vector<32x3xf32>, vector<4x3xf32> -> vector<4x3xf32>
    %c0_43 = arith.constant 0 : index
    %c0_44 = arith.constant 0 : index
    %48 = vector.load %arg7[%c0_43, %c0_44] : memref<1x3xf32, #tpu.memory_space<vmem>>, vector<1x3xf32>
    %49 = vector.broadcast %48 : vector<1x3xf32> to vector<4x3xf32>
    %50 = arith.addf %47, %49 : vector<4x3xf32>
    %c0_45 = arith.constant 0 : index
    %c0_46 = arith.constant 0 : index
    %c0_47 = arith.constant 0 : index
    %51 = vector.load %arg8[%c0_45, %c0_46, %c0_47] : memref<1x4x3xf32, #tpu.memory_space<vmem>>, vector<1x4x3xf32>
    %52 = vector.shape_cast %51 : vector<1x4x3xf32> to vector<4x3xf32>
    %53 = vector.shape_cast %50 : vector<4x3xf32> to vector<1x4x3xf32>
    tpu.vector_store %arg8[%c0_45, %c0_46, %c0_47], %53 {strides = array<i32>} : memref<1x4x3xf32, #tpu.memory_space<vmem>>, vector<1x4x3xf32>,
    return
  }
  func.func @transform_0(%arg0: i32) -> (i32, i32, i32) {
    %c0_i32 = arith.constant 0 : i32
    %c0_i32_0 = arith.constant 0 : i32
    %c0_i32_1 = arith.constant 0 : i32
    return %arg0, %c0_i32, %c0_i32_0 : i32, i32, i32
  }
  func.func @transform_1(%arg0: i32) -> (i32, i32, i32) {
    %c0_i32 = arith.constant 0 : i32
    %c0_i32_0 = arith.constant 0 : i32
    %c0_i32_1 = arith.constant 0 : i32
    return %arg0, %c0_i32, %c0_i32_0 : i32, i32, i32
  }
  func.func @transform_2(%arg0: i32) -> (i32, i32, i32) {
    %c0_i32 = arith.constant 0 : i32
    %c0_i32_0 = arith.constant 0 : i32
    %c0_i32_1 = arith.constant 0 : i32
    return %arg0, %c0_i32, %c0_i32_0 : i32, i32, i32
  }
  func.func @transform_3(%arg0: i32) -> (i32, i32, i32) {
    %c0_i32 = arith.constant 0 : i32
    %c0_i32_0 = arith.constant 0 : i32
    %c0_i32_1 = arith.constant 0 : i32
    %c0_i32_2 = arith.constant 0 : i32
    return %c0_i32, %c0_i32_0, %c0_i32_1 : i32, i32, i32
  }
  func.func @transform_4(%arg0: i32) -> (i32, i32) {
    %c0_i32 = arith.constant 0 : i32
    %c0_i32_0 = arith.constant 0 : i32
    %c0_i32_1 = arith.constant 0 : i32
    return %c0_i32, %c0_i32_0 : i32, i32
  }
  func.func @transform_5(%arg0: i32) -> (i32, i32, i32) {
    %c0_i32 = arith.constant 0 : i32
    %c0_i32_0 = arith.constant 0 : i32
    %c0_i32_1 = arith.constant 0 : i32
    %c0_i32_2 = arith.constant 0 : i32
    return %c0_i32, %c0_i32_0, %c0_i32_1 : i32, i32, i32
  }
  func.func @transform_6(%arg0: i32) -> (i32, i32) {
    %c0_i32 = arith.constant 0 : i32
    %c0_i32_0 = arith.constant 0 : i32
    %c0_i32_1 = arith.constant 0 : i32
    return %c0_i32, %c0_i32_0 : i32, i32
  }
  func.func @transform_7(%arg0: i32) -> (i32, i32, i32) {
    %c0_i32 = arith.constant 0 : i32
    %c0_i32_0 = arith.constant 0 : i32
    %c0_i32_1 = arith.constant 0 : i32
    return %arg0, %c0_i32, %c0_i32_0 : i32, i32, i32
  }
}

</mosaic_0001>

<bundles_post_ra>
// kernel: tpu_custom_call.1
= control target key start
LH: loop header
LB: loop body
LE: loop exit
PB: predicated region body
PF: predicated region fallthrough
CT: control target
= control target key end

     0   :  { %s2164_s0 = inlined_call_operand.hbm [shape: f32[8,32,32], index: 0, kind: input, shape index: {}]   ;;  %s2165_s1 = inlined_call_operand.hbm [shape: f32[8,32,32], index: 1, kind: input, shape index: {}]   ;;  %s2166_s2 = inlined_call_operand.vmem [shape: f32[8,4,32], index: 2, kind: input, shape index: {}]   ;;  %s2167_s3 = inlined_call_operand.hbm [shape: f32[4,32,32], index: 3, kind: input, shape index: {}]   ;;  %s2168_s4 = inlined_call_operand.vmem [shape: f32[4,32], index: 4, kind: input, shape index: {}]   ;;  %s2169_s5 = inlined_call_operand.vmem [shape: f32[2,32,3], index: 5, kind: input, shape index: {}]   ;;  %s2170_s6 = inlined_call_operand.vmem [shape: f32[1,3], index: 6, kind: input, shape index: {}]   ;;  %s2171_s7 = inlined_call_operand.vmem [shape: f32[8,4,3], index: 7, kind: output, shape index: {}]  }
   0x1   :  { %2178 = sst [smem:[#allocation10_spill]] %s2164_s0 }
   0x2   :  { %12 = vsyncpa [#allocation3], 0 }
   0x3   :  { %14 = vsyncpa [#allocation3 + $0x1], 0 }
   0x4   :  { %15 = vsyncpa [#allocation5], 0 }
   0x5   :  { %17 = vsyncpa [#allocation5 + $0x1], 0  ;;  %s1883_s24 = smov 0   ;;  %s1885_s25 = smov 0  }
   0x6   :  { %s1887_s26 = smov 0   ;;  %s1889_s27 = smov 0  }
   0x7 LB: > { %s1902_s28 = sadd.s32 4294967295, %s1834_s27   ;;  %p43_p0 = scmp.ne.s32.totalorder %s1826_s25, %s1822_s24  ;;  %s1834_s27 = sphi %s1889_s27, %s2192_s27   ;;  %s1830_s26 = sphi %s1887_s26, %s2191_s26   ;;  %s1826_s25 = sphi %s1885_s25, %s2190_s25   ;;  %s1822_s24 = sphi %s1883_s24, %s2189_s24  }
   0x8   : > { %p2176_p1 = scmp.eq.s32.totalorder %s1902_s28, 0  ;;  %p1398_p2 = scmp.ge.s32.totalorder %s1834_s27, 1 }
   0x9   : > { %p216_p3 = scmp.lt.s32.totalorder %s1834_s27, 9  ;;  %s1836_s8 = smov [#allocation6]  }
   0xa   : > { %p1910_p4 = por %p2176_p1, %p43_p0  ;;  %s228_s9 = sshll.u32 %s1836_s8, 4  ;;  %s229_s9 = int_to_ptr.vmem [resolvable:$true] %s228_s9 }
   0xb   : > { %p1914_p5 = pnand %p1398_p2, %p216_p3  ;;  %s1927_s11 = sadd.s32 1, %s1834_s27  }
   0xc   : > { %s2179_s29 = scalar_select %p1910_p4, 1, 0 }
   0xd   : > { %p1659_p6 = pneg %p1914_p5  ;;  %s30_s12 = sadd.s32 1, %s1830_s26 }
   0xe   : > { %s27_s13 = ssub.s32 %s1834_s27, %s1927_s11  ;;  %s1721_s14 = scalar_lea.vmem %s229_s9, 2048 }
   0xf   : > { %p1922_p7 = pnand %p1659_p6, %p2176_p1  ;;  %p1722_p9 = scmp.ne.s32.totalorder %s229_s9, %s1721_s14 }
  0x10   : > { %p1729_p12 = scmp.lt.s32.totalorder %s229_s9, %s229_s9  ;;  %p1730_p13 = scmp.lt.s32.totalorder %s1721_s14, %s1721_s14 }
  0x11   : > { %p1712_p8 = pneg %p1922_p7 }
  0x12   : > { %p1731_p0 = por %p1730_p13, %p1729_p12 }
  0x13   : > { %p1724_p10 = pnand %p1722_p9, %p1712_p8 }
  0x15   : > { %p1725_p11 = pneg %p1724_p10 }
  0x17   : > { %p1732_p2 = pnand %p1731_p0, %p1725_p11 }
  0x19   : > { %1735 = shalt.err (!%p1732_p2)
}
  0x1a   : > { %s2172_s15 = smov 128   ;;  %s2174_s16 = smov 8  }
  0x1b   : > { %1662 = dma.hbm_to_vmem [thread:$0]  (!%p1922_p7), %s2167_s3, 2048, %s229_s9, [#allocation5], %s2172_s15, %s2172_s15, %s2174_s16  }
  0x1c   : > { %p28_p3 = scmp.eq.s32.totalorder %s27_s13, 0  ;;  %p37_p6 = scmp.ne.s32.totalorder %s1830_s26, %s1826_s25 }
  0x1d   : > { %p38_p8 = scmp.eq.s32.totalorder %s1834_s27, 0  ;;  %p1671_p9 = scmp.lt.s32.totalorder %s1834_s27, 8 }
  0x1e   : > { %s1947_s19 = scalar_select %p28_p3, %s1830_s26, %s30_s12  }
  0x1f   : > { %p39_p10 = por %p38_p8, %p37_p6  ;;  %s251_s20 = sand.u32 1, %s1830_s26  }
  0x20   : > { %s1401_s21 = sshll.u32 %s251_s20, 5  ;;  %s1457_s22 = sshll.u32 %s1834_s27, 9 }
  0x21   : > { %s2182_s0 = sld [smem:[#allocation10_spill]]  ;;  %s255_s10 = scalar_lea.vmem [#allocation2], %s1401_s21 }
  0x22   : > { %s262_s9 = sshll.u32 %s255_s10, 4  ;;  %p1958_p7 = pnand %p1671_p9, %p39_p10  ;;  %s1956_s9 = int_to_ptr.vmem [resolvable:$true] %s262_s9 }
  0x23   : > { %s1965_s17 = scalar_lea.hbm %s2165_s1, %s1457_s22  ;;  %s276_s18 = scalar_lea.vmem [#allocation4], %s1401_s21 }
  0x24   : > { %s1967_s23 = sshll.u32 %s276_s18, 4  ;;  %s1969_s24 = scalar_lea.sflag [#allocation3], %s251_s20  ;;  %s2000_s23 = int_to_ptr.vmem [resolvable:$true] %s1967_s23 }
  0x25   : > { %p1738_p12 = pneg %p1958_p7 }
  0x27   : > { %s1954_s8 = scalar_lea.hbm %s2182_s0, %s1457_s22  ;;  %s1741_s12 = scalar_lea.hbm %s2182_s0, 4096 }
  0x28   : > { %s1736_s15 = scalar_lea.hbm %s1954_s8, 512  ;;  %p1742_p2 = scmp.lt.s32.totalorder %s1954_s8, %s2182_s0 }
  0x29   : > { %p1737_p11 = scmp.ne.s32.totalorder %s1954_s8, %s1736_s15  ;;  %p1743_p3 = scmp.lt.s32.totalorder %s1741_s12, %s1736_s15 }
  0x2b   : > { %p1739_p13 = pnand %p1738_p12, %p1737_p11  ;;  %p1744_p6 = por %p1743_p3, %p1742_p2 }
  0x2d   : > { %p1740_p0 = pneg %p1739_p13 }
  0x2f   : > { %p1745_p8 = pnand %p1744_p6, %p1740_p0 }
  0x31   : > { %1748 = shalt.err (!%p1745_p8)
}
  0x32   : > { %s1749_s20 = scalar_lea.vmem %s1956_s9, 512  ;;  %s1839_s16 = smov [#allocation2]  }
  0x33   : > { %p1750_p9 = scmp.ne.s32.totalorder %s1956_s9, %s1749_s20  ;;  %s1754_s21 = sshll.u32 %s1839_s16, 4  ;;  %s1755_s21 = int_to_ptr.vmem [resolvable:$false] %s1754_s21 }
  0x34   : > { %s1756_s18 = scalar_lea.vmem %s1755_s21, 1024  ;;  %p1757_p13 = scmp.lt.s32.totalorder %s1956_s9, %s1755_s21 }
  0x35   : > { %p1752_p10 = pnand %p1750_p9, %p1738_p12  ;;  %p1758_p1 = scmp.lt.s32.totalorder %s1756_s18, %s1749_s20 }
  0x37   : > { %p1753_p11 = pneg %p1752_p10  ;;  %p1759_p4 = por %p1758_p1, %p1757_p13 }
  0x39   : > { %p1760_p2 = pnand %p1759_p4, %p1753_p11 }
  0x3b   : > { %1763 = shalt.err (!%p1760_p2)
}
  0x3c   : > { %s2184_s15 = smov 8   ;;  %s2185_s10 = smov 128  }
  0x3d   : > { %1666 = dma.hbm_to_vmem [thread:$0]  (!%p1958_p7), %s1954_s8, 512, %s1956_s9, %s1969_s24, %s2185_s10, %s2185_s10, %s2184_s15  }
  0x3e   : > { %s272_s12 = sand.u32 1, %s1834_s27   ;;  %s1764_s22 = scalar_lea.hbm %s1965_s17, 512 }
  0x3f   : > { %s273_s14 = scalar_lea.sflag [#allocation5], %s272_s12  ;;  %p1765_p1 = scmp.ne.s32.totalorder %s1965_s17, %s1764_s22 }
  0x40   : > { %s1769_s21 = scalar_lea.hbm %s2165_s1, 4096  ;;  %p1770_p3 = scmp.lt.s32.totalorder %s1965_s17, %s2165_s1 }
  0x41   : > { %p1767_p4 = pnand %p1765_p1, %p1738_p12  ;;  %p1771_p6 = scmp.lt.s32.totalorder %s1769_s21, %s1764_s22 }
  0x43   : > { %p1768_p0 = pneg %p1767_p4  ;;  %p1772_p8 = por %p1771_p6, %p1770_p3 }
  0x45   : > { %p1773_p9 = pnand %p1772_p8, %p1768_p0 }
  0x47   : > { %1776 = shalt.err (!%p1773_p9)
}
  0x48   : > { %s1777_s27 = scalar_lea.vmem %s2000_s23, 512  ;;  %s1840_s8 = smov [#allocation4]  }
  0x49   : > { %p1778_p10 = scmp.ne.s32.totalorder %s2000_s23, %s1777_s27  ;;  %s1782_s9 = sshll.u32 %s1840_s8, 4  ;;  %s1783_s9 = int_to_ptr.vmem [resolvable:$false] %s1782_s9 }
  0x4a   : > { %s1784_s24 = scalar_lea.vmem %s1783_s9, 1024  ;;  %p1785_p2 = scmp.lt.s32.totalorder %s2000_s23, %s1783_s9 }
  0x4b   : > { %p1780_p11 = pnand %p1778_p10, %p1738_p12  ;;  %p1786_p1 = scmp.lt.s32.totalorder %s1784_s24, %s1777_s27 }
  0x4d   : > { %p1781_p13 = pneg %p1780_p11  ;;  %p1787_p4 = por %p1786_p1, %p1785_p2 }
  0x4f   : > { %p1788_p3 = pnand %p1787_p4, %p1781_p13 }
  0x51   : > { %1791 = shalt.err (!%p1788_p3)
}
  0x52   : > { %1669 = dma.hbm_to_vmem [thread:$0]  (!%p1958_p7), %s1965_s17, 512, %s2000_s23, %s273_s14, %s2185_s10, %s2185_s10, %s2184_s15  }
  0x53   : > { %302 = sbr.rel (%p1914_p5) target bundleno = 1707 (0x6ab), region = 48  ;;  %s304_s0 = sand.u32 (!%p1914_p5), 1, %s1826_s25  }
  0x54   : > { %s1408_s12 = sshll.u32 (!%p1914_p5), %s304_s0, 5  ;;  %s305_s22 = scalar_lea.sflag (!%p1914_p5), [#allocation3], %s304_s0 }
  0x55   : > { %s308_s20 = scalar_lea.vmem (!%p1914_p5), [#allocation2], %s1408_s12  ;;  %p2186_p12 = scmp.ne.s32.totalorder (!%p1914_p5), %s2179_s29, 0 }
  0x58   : > { %1809 = dma.done.wait (%p2186_p12), %s305_s22, 512  }
  0x59   : > { %1811 = vsyncadd (%p2186_p12), %s305_s22, 4294966784  ;;  %s313_s13 = sand.u32 1, %s1902_s28   ;;  %s317_s21 = scalar_lea.vmem [#allocation4], %s1408_s12 }
  0x5a   : > { %s314_s16 = scalar_lea.sflag [#allocation5], %s313_s13 }
  0x5b   : > { %1813 = dma.done.wait (%p2186_p12), %s314_s16, 512  }
  0x5c   : > { %1815 = vsyncadd (%p2186_p12), %s314_s16, 4294966784  ;;  %p2187_p5 = scmp.eq.s32.totalorder %s1902_s28, 0 }
  0x5e   : > { %1817 = dma.done.wait (%p2187_p5), [#allocation5], 2048   ;;  %p2188_p7 = pmov %p2187_p5 }
  0x5f   : > { %vm377_vm0 = vcmask 261120   ;;  %v371_v0 = vld [vmem:[%s308_s20 + $0x18] sm:$0xff]  ;;  %v370_v1 = vld [vmem:[%s308_s20 + $0x10] sm:$0xff]  ;;  %v372_v2 = vld [vmem:[%s317_s21] sm:$0xff]  ;;  %vm1842_vm1 = vmmov 0   ;;  %p360_p0 = scmp.lt.s32.totalorder %s1902_s28, 7 }
  0x60   : > { %1819 = vsyncadd (%p2188_p7), [#allocation5], 4294965248  ;;  %1528 = vmatprep.subr.mxu0 %v371_v0  ;;  %v369_v3 = vld [vmem:[%s308_s20 + $0x8] sm:$0xff]  ;;  %1536 = vmatprep.mubr.msk.f32.mxu0 %vm377_vm0, %v372_v2  ;;  %v478_v4 = vld [vmem:[#allocation6 + $0x18] sm:$0xff]  ;;  %vm1286_vm2 = vcmask 19456  }
  0x61   : > { %1529 = vmatpush3.msra.mxu0 %v371_v0  ;;  %1542 = vmatprep.subr.mxu1 %v478_v4  ;;  %v477_v5 = vld [vmem:[#allocation6 + $0x10] sm:$0xff]  ;;  %v368_v6 = vld [vmem:[%s308_s20] sm:$0xff]  ;;  %v2045_v7 = vld [vmem:[%s317_s21 + $0x8] sm:$0xff]  ;;  %s2194_s28 = smov (!%p360_p0, %s1902_s28), 7 }
  0x62   : > { %1530 = vmatprep.subr.mxu0 %v370_v1  ;;  %1543 = vmatpush3.msra.mxu1 %v478_v4  ;;  %v2047_v8 = vld [vmem:[%s317_s21 + $0x10] sm:$0xff]  ;;  %v2053_v9 = vld [vmem:[%s317_s21 + $0x18] sm:$0xff]  ;;  %v476_v10 = vld [vmem:[#allocation6 + $0x8] sm:$0xff]  ;;  %s1411_s10 = sshll.u32 %s2194_s28, 2 }
  0x63   : > { %1531 = vmatpush3.msra.mxu0 %v370_v1  ;;  %1544 = vmatprep.subr.mxu1 %v477_v5  ;;  %v475_v11 = vld [vmem:[#allocation6] sm:$0xff]  ;;  %v589_v16 = vld [vmem:[#allocation6 + $0x38] sm:$0xff]  ;;  %v588_v17 = vld [vmem:[#allocation6 + $0x30] sm:$0xff]  ;;  %s363_s27 = scalar_lea.vmem %s2166_s2, %s1411_s10  ;;  %s367_s0 = scalar_lea.vmem %s2171_s7, %s1411_s10 }
  0x64   : > { %1532 = vmatprep.subr.mxu0 %v369_v3  ;;  %1545 = vmatpush3.msra.mxu1 %v477_v5  ;;  %v587_v18 = vld [vmem:[#allocation6 + $0x28] sm:$0xff]  ;;  %v586_v19 = vld [vmem:[#allocation6 + $0x20] sm:$0xff]  ;;  %v785_v33 = vld [vmem:[#allocation6 + $0x58] sm:$0xff] }
  0x65   : > { %1533 = vmatpush3.msra.mxu0 %v369_v3  ;;  %1546 = vmatprep.subr.mxu1 %v476_v10  ;;  %v1417_v20 = vld [vmem:[%s2168_s4] ss:$0 sm:$0xff]  ;;  %v784_v34 = vld [vmem:[#allocation6 + $0x50] sm:$0xff]  ;;  %v1422_v37 = vld [vmem:[%s2168_s4 + $0x1] ss:$0 sm:$0xff] }
  0x66   : > { %1534 = vmatprep.subr.mxu0 %v368_v6  ;;  %1547 = vmatpush3.msra.mxu1 %v476_v10  ;;  %v783_v48 = vld [vmem:[#allocation6 + $0x48] sm:$0xff]  ;;  %v782_v49 = vld [vmem:[#allocation6 + $0x40] sm:$0xff]  ;;  %v896_v54 = vld [vmem:[#allocation6 + $0x78] sm:$0xff] }
  0x67   : > { %1535 = vmatpush3.msra.mxu0 %v368_v6  ;;  %1548 = vmatprep.subr.mxu1 %v475_v11  ;;  %v895_v55 = vld [vmem:[#allocation6 + $0x70] sm:$0xff]  ;;  %v894_v56 = vld [vmem:[#allocation6 + $0x68] sm:$0xff]  ;;  %v893_v57 = vld [vmem:[#allocation6 + $0x60] sm:$0xff] }
  0x68   : > { %1537 = vmatmul.mubr.msk.f32.vlgmr.msra.gmra.mxu0 %vm377_vm0, %v2045_v7  ;;  %1549 = vmatpush3.msra.mxu1 %v475_v11  ;;  %v1006_v58 = vld [vmem:[%s2169_s5 + $0x18] sm:$0xff]  ;;  %v1431_v59 = vld [vmem:[%s2168_s4 + $0x2] ss:$0 sm:$0xff]  ;;  %v1005_v6 = vld [vmem:[%s2169_s5 + $0x10] sm:$0xff] }
  0x69   : > { %1539 = vmatprep.mubr.msk.f32.mxu0 %vm377_vm0, %v2047_v8  ;;  %1556 = vmatprep.subr.mxu0 %v589_v16  ;;  %v1003_v10 = vld [vmem:[%s2169_s5] sm:$0xff]  ;;  %v1444_v11 = vld [vmem:[%s2169_s5 + $0x38] sm:$0xff] }
  0x6a   : > { %1557 = vmatpush3.msra.mxu0 %v589_v16 }
  0x6b   : > { %1558 = vmatprep.subr.mxu0 %v588_v17 }
  0x6c   : > { %1540 = vmatmul.mubr.msk.f32.gmra.mxu0 %vm377_vm0, %v2053_v9 }
  0x6d   : > { %1559 = vmatpush3.msra.mxu0 %v588_v17 }
  0x6e   : > { %1560 = vmatprep.subr.mxu0 %v587_v18 }
  0x6f   : > { %1561 = vmatpush3.msra.mxu0 %v587_v18 }
  0x70   : > { %1562 = vmatprep.subr.mxu0 %v586_v19 }
  0x71   : > { %1563 = vmatpush3.msra.mxu0 %v586_v19 }
  0x72   : > { %1584 = vmatprep.subr.mxu0 %v785_v33 }
 0x128   : > { %v1538_v12 = vpop.f32.mrf.mxu0 }
 0x12a   : > { %v456_v13 = vpop.f32.mrf.mxu0 }
 0x12b   : > { %1550 = vmatprep.mubr.msk.f32.mxu1 %vm377_vm0, %v456_v13  ;;  %v1442_v13 = vld [vmem:[%s2169_s5 + $0x28] sm:$0xff] }
 0x12c   : > { %v1541_v14 = vpop.f32.mrf.mxu0  ;;  %1551 = vmatmul.mubr.msk.f32.vlgmr.msra.gmra.mxu1 %vm377_vm0, %v1538_v12  ;;  %v1443_v12 = vld [vmem:[%s2169_s5 + $0x30] sm:$0xff] }
 0x12e   : > { %v466_v15 = vpop.f32.mrf.mxu0 }
 0x12f   : > { %1553 = vmatprep.mubr.msk.f32.mxu1 %vm377_vm0, %v466_v15  ;;  %v1436_v15 = vld [vmem:[%s2168_s4 + $0x3] ss:$0 sm:$0xff] }
 0x130   : > { %1554 = vmatmul.mubr.msk.f32.gmra.mxu1 %vm377_vm0, %v1541_v14  ;;  %v1441_v14 = vld [vmem:[%s2169_s5 + $0x20] sm:$0xff] }
 0x131   : > { %1578 = vmatprep.mubr.msk.f32.mxu1 %vm377_vm0, %v372_v2 }
 0x1ec   : > { %v1552_v21 = vpop.f32.mrf.mxu1 }
 0x1ed   : > { %v568_v22 = vadd.f32 %v1552_v21, %v1417_v20 }
 0x1ee   : > { %v562_v23 = vpop.f32.mrf.mxu1 }
 0x1ef   : > { %v563_v24 = vadd.f32 %v1417_v20, %v562_v23  ;;  %v582_v27 = vmax.f32 %v568_v22, 0.0 }
 0x1f0   : > { %v1555_v25 = vpop.f32.mrf.mxu1 }
 0x1f1   : > { %v581_v26 = vmax.f32 %v563_v24, 0.0  ;;  %v578_v28 = vadd.f32 %v1555_v25, %v1417_v20 }
 0x1f2   : > { %v572_v29 = vpop.f32.mrf.mxu1 }
 0x1f3   : > { %v573_v30 = vadd.f32 %v1417_v20, %v572_v29  ;;  %1564 = vmatprep.mubr.msk.f32.mxu0 %vm377_vm0, %v581_v26  ;;  %v584_v32 = vmax.f32 %v578_v28, 0.0  ;;  %v1841_v28 = vmov 0.0  }
 0x1f4   : > { %1565 = vmatmul.mubr.msk.f32.vlgmr.msra.gmra.mxu0 %vm377_vm0, %v582_v27 }
 0x1f5   : > { %v583_v31 = vmax.f32 %v573_v30, 0.0  ;;  %1585 = vmatpush3.msra.mxu0 %v785_v33 }
 0x1f6   : > { %1586 = vmatprep.subr.mxu0 %v784_v34 }
 0x1f7   : > { %1567 = vmatprep.mubr.msk.f32.mxu0 %vm377_vm0, %v583_v31  ;;  %1587 = vmatpush3.msra.mxu0 %v784_v34 }
 0x1f8   : > { %1568 = vmatmul.mubr.msk.f32.gmra.mxu0 %vm377_vm0, %v584_v32  ;;  %1588 = vmatprep.subr.mxu0 %v783_v48 }
 0x1f9   : > { %1589 = vmatpush3.msra.mxu0 %v783_v48 }
 0x1fa   : > { %1590 = vmatprep.subr.mxu0 %v782_v49 }
 0x1fb   : > { %1591 = vmatpush3.msra.mxu0 %v782_v49 }
 0x1fc   : > { %1612 = vmatprep.subr.mxu0 %v1444_v11 }
 0x2b4   : > { %v1566_v35 = vpop.f32.mrf.mxu0 }
 0x2b5   : > { %v679_v41 = vadd.f32 %v1566_v35, %v1422_v37 }
 0x2b6   : > { %v673_v36 = vpop.f32.mrf.mxu0 }
 0x2b7   : > { %v674_v44 = vadd.f32 %v1422_v37, %v673_v36  ;;  %v2078_v46 = vmax.f32 %v679_v41, 0.0  ;;  %v376_v41 = vld [vmem:[%s363_s27] sm:$0xf] }
 0x2b8   : > { %v1569_v38 = vpop.f32.mrf.mxu0 }
 0x2b9   : > { %v689_v39 = vadd.f32 %v1569_v38, %v1422_v37  ;;  %v692_v47 = vmax.f32 %v674_v44, 0.0 }
 0x2ba   : > { %v683_v40 = vpop.f32.mrf.mxu0 }
 0x2bb   : > { %v2072_v42 = vmax.f32 %v689_v39, 0.0  ;;  %v684_v43 = vadd.f32 %v1422_v37, %v683_v40 }
 0x2bd   : > { %v2074_v45 = vmax.f32 %v684_v43, 0.0  ;;  %1570 = vmatprep.subr.mxu1 %v2072_v42 }
 0x2be   : > { %1571 = vmatpush3.msra.mxu1 %v2072_v42 }
 0x2bf   : > { %1572 = vmatprep.subr.mxu1 %v2074_v45 }
 0x2c0   : > { %1573 = vmatpush3.msra.mxu1 %v2074_v45 }
 0x2c1   : > { %1574 = vmatprep.subr.mxu1 %v2078_v46 }
 0x2c2   : > { %1575 = vmatpush3.msra.mxu1 %v2078_v46 }
 0x2c3   : > { %1576 = vmatprep.subr.mxu1 %v692_v47 }
 0x2c4   : > { %1577 = vmatpush3.msra.mxu1 %v692_v47 }
 0x2c5   : > { %1579 = vmatmul.mubr.msk.f32.vlgmr.msra.gmra.mxu1 %vm377_vm0, %v2045_v7  ;;  %1598 = vmatprep.subr.mxu1 %v896_v54 }
 0x2c6   : > { %1581 = vmatprep.mubr.msk.f32.mxu1 %vm377_vm0, %v2047_v8  ;;  %1599 = vmatpush3.msra.mxu1 %v896_v54  ;;  %v1004_v8 = vld [vmem:[%s2169_s5 + $0x8] sm:$0xff] }
 0x2c7   : > { %1600 = vmatprep.subr.mxu1 %v895_v55 }
 0x2c8   : > { %1601 = vmatpush3.msra.mxu1 %v895_v55 }
 0x2c9   : > { %1582 = vmatmul.mubr.msk.f32.gmra.mxu1 %vm377_vm0, %v2053_v9  ;;  %1602 = vmatprep.subr.mxu1 %v894_v56 }
 0x2ca   : > { %1603 = vmatpush3.msra.mxu1 %v894_v56 }
 0x2cb   : > { %1604 = vmatprep.subr.mxu1 %v893_v57 }
 0x2cc   : > { %1605 = vmatpush3.msra.mxu1 %v893_v57 }
 0x2cd   : > { %1626 = vmatprep.subr.mxu1 %v1006_v58 }
 0x385   : > { %v1580_v50 = vpop.f32.mrf.mxu1 }
 0x387   : > { %v762_v51 = vpop.f32.mrf.mxu1 }
 0x388   : > { %1592 = vmatprep.mubr.msk.f32.mxu0 %vm377_vm0, %v762_v51 }
 0x389   : > { %v1583_v52 = vpop.f32.mrf.mxu1  ;;  %1593 = vmatmul.mubr.msk.f32.vlgmr.msra.gmra.mxu0 %vm377_vm0, %v1580_v50 }
 0x38a   : > { %1613 = vmatpush3.msra.mxu0 %v1444_v11 }
 0x38b   : > { %v772_v53 = vpop.f32.mrf.mxu1  ;;  %1614 = vmatprep.subr.mxu0 %v1443_v12 }
 0x38c   : > { %1595 = vmatprep.mubr.msk.f32.mxu0 %vm377_vm0, %v772_v53  ;;  %1615 = vmatpush3.msra.mxu0 %v1443_v12 }
 0x38d   : > { %1596 = vmatmul.mubr.msk.f32.gmra.mxu0 %vm377_vm0, %v1583_v52  ;;  %1616 = vmatprep.subr.mxu0 %v1442_v13 }
 0x38e   : > { %1617 = vmatpush3.msra.mxu0 %v1442_v13 }
 0x38f   : > { %1618 = vmatprep.subr.mxu0 %v1441_v14 }
 0x390   : > { %1619 = vmatpush3.msra.mxu0 %v1441_v14 }
 0x391   : > { %1640 = vmatprep.subr.mxu0 %v1841_v28 }
 0x449   : > { %v1594_v60 = vpop.f32.mrf.mxu0 }
 0x44a   : > { %v875_v61 = vadd.f32 %v1594_v60, %v1431_v59 }
 0x44b   : > { %v869_v62 = vpop.f32.mrf.mxu0 }
 0x44c   : > { %v870_v63 = vadd.f32 %v1431_v59, %v869_v62  ;;  %v889_v2 = vmax.f32 %v875_v61, 0.0 }
 0x44d   : > { %v1597_v0 = vpop.f32.mrf.mxu0 }
 0x44e   : > { %v888_v1 = vmax.f32 %v870_v63, 0.0  ;;  %v885_v3 = vadd.f32 %v1597_v0, %v1431_v59 }
 0x44f   : > { %v879_v4 = vpop.f32.mrf.mxu0 }
 0x450   : > { %v880_v5 = vadd.f32 %v1431_v59, %v879_v4  ;;  %1606 = vmatprep.mubr.msk.f32.mxu1 %vm377_vm0, %v888_v1  ;;  %v891_v9 = vmax.f32 %v885_v3, 0.0 }
 0x451   : > { %1607 = vmatmul.mubr.msk.f32.vlgmr.msra.gmra.mxu1 %vm377_vm0, %v889_v2 }
 0x452   : > { %v890_v7 = vmax.f32 %v880_v5, 0.0  ;;  %1627 = vmatpush3.msra.mxu1 %v1006_v58 }
 0x453   : > { %1628 = vmatprep.subr.mxu1 %v1005_v6 }
 0x454   : > { %1609 = vmatprep.mubr.msk.f32.mxu1 %vm377_vm0, %v890_v7  ;;  %1629 = vmatpush3.msra.mxu1 %v1005_v6 }
 0x455   : > { %1610 = vmatmul.mubr.msk.f32.gmra.mxu1 %vm377_vm0, %v891_v9  ;;  %1630 = vmatprep.subr.mxu1 %v1004_v8 }
 0x456   : > { %1631 = vmatpush3.msra.mxu1 %v1004_v8  ;;  %1634 = vmatprep.mubr.msk.f32.mxu1 %vm377_vm0, %v692_v47 }
 0x457   : > { %1632 = vmatprep.subr.mxu1 %v1003_v10 }
 0x458   : > { %1633 = vmatpush3.msra.mxu1 %v1003_v10 }
 0x459   : > { %1635 = vmatmul.mubr.msk.f32.vlgmr.msra.gmra.mxu1 %vm377_vm0, %v2078_v46 }
 0x45a   : > { %1637 = vmatprep.mubr.msk.f32.mxu1 %vm377_vm0, %v2074_v45 }
 0x45d   : > { %1638 = vmatmul.mubr.msk.f32.gmra.mxu1 %vm377_vm0, %v2072_v42  ;;  %v1453_v42 = vld [vmem:[%s2170_s6] ss:$0 sm:$0xff] }
 0x511   : > { %v1608_v16 = vpop.f32.mrf.mxu1 }
 0x512   : > { %v986_v17 = vadd.f32 %v1608_v16, %v1436_v15 }
 0x513   : > { %v980_v18 = vpop.f32.mrf.mxu1 }
 0x514   : > { %v981_v19 = vadd.f32 %v1436_v15, %v980_v18  ;;  %v1000_v22 = vmax.f32 %v986_v17, 0.0 }
 0x515   : > { %v1611_v20 = vpop.f32.mrf.mxu1 }
 0x516   : > { %v999_v21 = vmax.f32 %v981_v19, 0.0  ;;  %v996_v23 = vadd.f32 %v1611_v20, %v1436_v15 }
 0x517   : > { %v990_v24 = vpop.f32.mrf.mxu1 }
 0x518   : > { %v991_v25 = vadd.f32 %v1436_v15, %v990_v24  ;;  %1620 = vmatprep.mubr.msk.f32.mxu0 %vm377_vm0, %v999_v21  ;;  %v1002_v27 = vmax.f32 %v996_v23, 0.0 }
 0x519   : > { %1621 = vmatmul.mubr.msk.f32.vlgmr.msra.gmra.mxu0 %vm377_vm0, %v1000_v22  ;;  %v1636_v29 = vpop.f32.mrf.mxu1 }
 0x51a   : > { %v1001_v26 = vmax.f32 %v991_v25, 0.0 }
 0x51b   : > { %v1187_v30 = vpop.f32.mrf.mxu1 }
 0x51c   : > { %1623 = vmatprep.mubr.msk.f32.mxu0 %vm377_vm0, %v1001_v26 }
 0x51d   : > { %1624 = vmatmul.mubr.msk.f32.gmra.mxu0 %vm377_vm0, %v1002_v27  ;;  %v1639_v32 = vpop.f32.mrf.mxu1 }
 0x51e   : > { %1648 = vmatprep.mubr.msk.f32.mxu0 %vm1842_vm1, %v1841_v28 }
 0x51f   : > { %v1197_v36 = vpop.f32.mrf.mxu1 }
 0x5d9   : > { %v1622_v31 = vpop.f32.mrf.mxu0 }
 0x5da   : > { %v1193_v39 = vadd.f32 %v1636_v29, %v1622_v31 }
 0x5db   : > { %v1090_v33 = vpop.f32.mrf.mxu0 }
 0x5dc   : > { %v1188_v40 = vadd.f32 %v1187_v30, %v1090_v33 }
 0x5dd   : > { %v1625_v34 = vpop.f32.mrf.mxu0 }
 0x5de   : > { %v1203_v35 = vadd.f32 %v1639_v32, %v1625_v34 }
 0x5df   : > { %v1100_v37 = vpop.f32.mrf.mxu0 }
 0x5e0   : > { %v1198_v38 = vadd.f32 %v1197_v36, %v1100_v37  ;;  %1641 = vmatpush3.msra.mxu0 %v1203_v35 }
 0x5e1   : > { %1642 = vmatprep.subr.mxu0 %v1841_v28 }
 0x5e2   : > { %1643 = vmatpush3.msra.mxu0 %v1198_v38 }
 0x5e3   : > { %1644 = vmatprep.subr.mxu0 %v1841_v28 }
 0x5e4   : > { %1645 = vmatpush3.msra.mxu0 %v1193_v39 }
 0x5e5   : > { %1646 = vmatprep.subr.mxu0 %v1841_v28 }
 0x5e6   : > { %1647 = vmatpush3.msra.mxu0 %v1188_v40 }
 0x5e7   : > { %1649 = vmatmul.mubr.msk.f32.vlgmr.msra.gmra.mxu0 %vm377_vm0, %v376_v41 }
 0x6a7   : > { %v1282_v43 = vpop.f32.mrf.mxu0 }
 0x6a8   : > { %v1283_v44 = vadd.f32 %v1453_v42, %v1282_v43 }
 0x6a9   : > { %v1650_v45 = vpop.f32.mrf.mxu0 }
 0x6aa   : > { %1287 = vst.msk [vmem:[%s367_s0] sm:$0xf] %vm1286_vm2, %v1283_v44 }
 0x6ab PF: > { %p20_p6 = scmp.ge.s32.totalorder %s1927_s11, 10   ;;  %s2189_s24 = smov %s1826_s25 }
 0x6ac   : > { %s2190_s25 = smov %s1830_s26  ;;  %s2191_s26 = smov %s1947_s19 }
 0x6ad   : > { %s2192_s27 = smov %s1927_s11  ;;  %22 = sbr.rel (!%p20_p6) target bundleno = 7 (0x7), region = 112 }
 0x6b2   :  { %1307 = vsyncpa [#allocation3], 1 }
 0x6b3   :  { %1309 = vsyncpa [#allocation3 + $0x1], 1 }
 0x6b4   :  { %1310 = vsyncpa [#allocation5], 1 }
 0x6b5   :  { %1312 = vsyncpa [#allocation5 + $0x1], 1 }

</bundles_post_ra>
